<compile_context>
chip_gen: v7x
topology: tpu7x:2x2x1
jax: 0.10.0
libtpu: 0.0.40
codegen_flags: <defaults>
</compile_context>

<pallas_src>
import functools

import jax
import jax.numpy as jnp
from jax.experimental import pallas as pl
from jax.experimental.pallas import tpu as pltpu

_LANES = 128
_TILE_R_MAX = 2048   # 2048*128*4B = 1 MiB per f32 input block; x2 in x2 bufs = 4 MiB


def _round_up(v, m):
    return ((v + m - 1) // m) * m


# ----------------------------------------------------------------------------
# Fused kernel: per row-tile, per bin b in [0, bins):
#   out[0, b, :]            = per-lane count of (bin_idx == b)
#   out[0, bins_pad + b, :] = per-lane sum of l over (bin_idx == b)
# where g = |sigmoid(x) - t|, bin_idx = floor(g*(bins-1e-4)),
#       l = max(x,0) - x*t + log1p(exp(-|x|))   (BCE with logits, unreduced).
# Only sublane reductions happen in-kernel; lane reduction is done in the glue.
# ----------------------------------------------------------------------------
def _ghm_fused_kernel(x_ref, t_ref, out_ref, *, bins, bins_pad):
    # Upcast immediately after load (inputs may be bf16; keeps HBM streams narrow).
    x = x_ref[...].astype(jnp.float32)            # (tile_r, 128)
    t = t_ref[...].astype(jnp.float32)

    # shared transcendental: e = exp(-|x|) feeds both sigmoid and softplus
    e = jnp.exp(-jnp.abs(x))
    inv = 1.0 / (1.0 + e)
    sig = jnp.where(x >= 0.0, inv, e * inv)       # exact sigmoid
    g = jnp.abs(sig - t)
    # g >= 0 so int cast (truncation) == floor
    bin_idx = (g * (bins - 0.0001)).astype(jnp.int32)
    # numerically-stable BCE with logits (reuses e for the softplus term)
    l = jnp.maximum(x, 0.0) - x * t + jnp.log1p(e)

    out_ref[...] = jnp.zeros_like(out_ref)        # deterministic padding rows
    for b in range(bins):                         # bins is small & static
        m = bin_idx == b
        cnt = jnp.sum(jnp.where(m, 1.0, 0.0), axis=0, keepdims=True)   # (1, 128)
        s = jnp.sum(jnp.where(m, l, 0.0), axis=0, keepdims=True)       # (1, 128)
        out_ref[0, pl.ds(b, 1), :] = cnt
        out_ref[0, pl.ds(bins_pad + b, 1), :] = s


# ----------------------------------------------------------------------------
# Pallas wrapper: lane-dense reshape + row tiling + parallel tile axis
# ----------------------------------------------------------------------------
def ghm_fused_partials(x, target, bins):
    assert bins <= _LANES, "bins must fit in one 128-lane register"
    total = int(x.size)
    xf = x.reshape(-1)
    tf = target.reshape(-1)
    if not jnp.issubdtype(tf.dtype, jnp.floating):
        tf = tf.astype(jnp.float32)   # pad value 0.5 must be representable

    rows = pl.cdiv(total, _LANES)
    tile_r = min(_TILE_R_MAX, _round_up(rows, 8))
    rows_pad = _round_up(rows, tile_r)
    pad = rows_pad * _LANES - total
    if pad:
        # Pad with (x=0, t=0.5): g = |sigmoid(0) - 0.5| = 0 -> bin 0 (robust to
        # any sigmoid rounding), l = log1p(exp(0)) = ln 2.  The known
        # contribution is subtracted below, so the kernel hot path needs no
        # per-element validity mask.  No pad copy at all when already aligned.
        xf = jnp.pad(xf, (0, pad))
        tf = jnp.pad(tf, (0, pad), constant_values=0.5)
    x2 = xf.reshape(rows_pad, _LANES)
    t2 = tf.reshape(rows_pad, _LANES)
    num_tiles = rows_pad // tile_r
    bins_pad = _round_up(bins, 8)
    # NOTE: for large inputs num_tiles >= 2 so the single "parallel" grid axis
    # load-balances across v7x's two TensorCores.

    kernel = functools.partial(_ghm_fused_kernel, bins=bins, bins_pad=bins_pad)
    out = pl.pallas_call(
        kernel,
        out_shape=jax.ShapeDtypeStruct((num_tiles, 2 * bins_pad, _LANES),
                                       jnp.float32),
        grid=(num_tiles,),
        in_specs=[pl.BlockSpec((tile_r, _LANES), lambda i: (i, 0)),
                  pl.BlockSpec((tile_r, _LANES), lambda i: (i, 0))],
        out_specs=pl.BlockSpec((1, 2 * bins_pad, _LANES), lambda i: (i, 0, 0)),
        compiler_params=pltpu.CompilerParams(
            dimension_semantics=("parallel",),
            vmem_limit_bytes=32 * 1024 * 1024),
    )(x2, t2)

    # Tiny cross-tile + cross-lane reduction in the JAX glue.  Per-tile per-lane
    # counts are exact small integers in f32, so the (>0) nonempty-bin test is
    # safe; exactness beyond that is not needed for beta.
    bin_count = out[:, :bins, :].sum(axis=(0, 2))                        # (bins,)
    loss_sums = out[:, bins_pad:bins_pad + bins, :].sum(axis=(0, 2))     # (bins,)
    if pad:
        ln2 = jnp.log1p(jnp.float32(1.0))          # matches the in-kernel value
        bin_count = bin_count.at[0].add(jnp.float32(-pad))
        loss_sums = loss_sums.at[0].add(-jnp.float32(pad) * ln2)
        bin_count = jnp.maximum(bin_count, 0.0)
    return bin_count, loss_sums


# ----------------------------------------------------------------------------
# Module-equivalent wrapper (keeps the _last_bin_count EMA state, like PyTorch)
# ----------------------------------------------------------------------------
class GHMCLossPallas:
    def __init__(self, bins, alpha):
        self._bins = bins
        self._alpha = alpha
        self._last_bin_count = None
        # TODO(synk): _last_bin_count is host-side Python EMA state (mirrors the
        # PyTorch module); thread it functionally if wrapping __call__ in jax.jit.

    def __call__(self, x, target):
        bins = self._bins
        bin_count, loss_sums = ghm_fused_partials(x, target, bins)   # (bins,), (bins,)

        if self._last_bin_count is None:
            self._last_bin_count = bin_count
        else:
            bin_count = (self._alpha * self._last_bin_count
                         + (1.0 - self._alpha) * bin_count)
            self._last_bin_count = bin_count

        N = x.shape[0] * 1                       # matches PyTorch: N = x.size(0) * 1
        nonempty_bins = jnp.sum(bin_count > 0).astype(jnp.float32)
        gd = jnp.maximum(bin_count * nonempty_bins, 0.0001)
        beta = (N / gd).astype(jnp.float32)      # (bins,)

        n_elem = int(x.size)                     # BCEWithLogits 'mean' over all elems
        # mean(beta[bin_idx] * l) == dot(beta, per-bin loss sums) / n_elem
        return jnp.dot(beta, loss_sums) / n_elem


# ----------------------------------------------------------------------------
# Pure-JAX reference (mirrors the PyTorch forward) for a sanity check
# ----------------------------------------------------------------------------
def ghm_reference(x, target, bins):
    g = jnp.abs(jax.nn.sigmoid(x) - target)
    bin_idx = jnp.floor(g * (bins - 0.0001)).astype(jnp.int32)
    bin_count = jnp.array(
        [jnp.sum(bin_idx == i).astype(jnp.float32) for i in range(bins)])
    N = x.shape[0] * 1
    nonempty = jnp.sum(bin_count > 0).astype(jnp.float32)
    gd = jnp.maximum(bin_count * nonempty, 0.0001)
    beta = N / gd
    w = beta[bin_idx]
    l = jnp.maximum(x, 0.0) - x * target + jnp.log1p(jnp.exp(-jnp.abs(x)))
    return jnp.mean(w * l)


if __name__ == "__main__":
    BINS = 10
    ALPHA = 0.75

    key = jax.random.PRNGKey(0)
    kx, kt = jax.random.split(key)
    # small shapes consistent with the forward: (batch, features)
    x = jax.random.normal(kx, (8, 32), dtype=jnp.float32)
    target = jax.random.bernoulli(kt, p=0.5, shape=(8, 32)).astype(jnp.float32)

    loss_mod = GHMCLossPallas(BINS, ALPHA)
    loss = jax.block_until_ready(loss_mod(x, target))

    ref = jax.block_until_ready(ghm_reference(x, target, BINS))
    assert jnp.allclose(loss, ref, rtol=1e-5, atol=1e-5), (loss, ref)

    print("KERNEL_OK")
</pallas_src>

<mosaic_0001>
module attributes {stable_mosaic.version = 11 : i64} {
  func.func @_ghm_fused_kernel(%arg0: i32, %arg1: memref<8x128xf32, #tpu.memory_space<vmem>>, %arg2: memref<8x128xf32, #tpu.memory_space<vmem>>, %arg3: memref<1x32x128xf32, #tpu.memory_space<vmem>>) attributes {dimension_semantics = [#tpu.dimension_semantics<parallel>], iteration_bounds = array<i64: 1>, scalar_prefetch = 0 : i64, scratch_operands = 0 : i64, tpu.core_type = #tpu.core_type<tc>, window_params = [{transform_indices = @transform_0, window_bounds = array<i64: 8, 128>}, {transform_indices = @transform_1, window_bounds = array<i64: 8, 128>}, {transform_indices = @transform_2, window_bounds = array<i64: 1, 32, 128>}]} {
    %c0 = arith.constant 0 : index
    %c0_0 = arith.constant 0 : index
    %0 = vector.load %arg1[%c0, %c0_0] : memref<8x128xf32, #tpu.memory_space<vmem>>, vector<8x128xf32>
    %c0_1 = arith.constant 0 : index
    %c0_2 = arith.constant 0 : index
    %1 = vector.load %arg2[%c0_1, %c0_2] : memref<8x128xf32, #tpu.memory_space<vmem>>, vector<8x128xf32>
    %2 = math.absf %0 : vector<8x128xf32>
    %cst = arith.constant 0.000000e+00 : f32
    %3 = vector.broadcast %cst : f32 to vector<8x128xf32>
    %4 = arith.subf %3, %2 : vector<8x128xf32>
    %5 = math.exp %4 : vector<8x128xf32>
    %cst_3 = arith.constant 1.000000e+00 : f32
    %6 = vector.broadcast %cst_3 : f32 to vector<8x128xf32>
    %7 = arith.addf %6, %5 : vector<8x128xf32>
    %cst_4 = arith.constant 1.000000e+00 : f32
    %8 = vector.broadcast %cst_4 : f32 to vector<8x128xf32>
    %9 = arith.divf %8, %7 : vector<8x128xf32>
    %cst_5 = arith.constant 0.000000e+00 : f32
    %10 = vector.broadcast %cst_5 : f32 to vector<8x128xf32>
    %11 = arith.cmpf oge, %0, %10 : vector<8x128xf32>
    %12 = arith.mulf %5, %9 : vector<8x128xf32>
    %13 = arith.select %11, %9, %12 : vector<8x128xi1>, vector<8x128xf32>
    %14 = arith.subf %13, %1 : vector<8x128xf32>
    %15 = math.absf %14 : vector<8x128xf32>
    %cst_6 = arith.constant 9.99989986 : f32
    %16 = vector.broadcast %cst_6 : f32 to vector<8x128xf32>
    %17 = arith.mulf %15, %16 : vector<8x128xf32>
    %18 = arith.fptosi %17 : vector<8x128xf32> to vector<8x128xi32>
    %cst_7 = arith.constant 0.000000e+00 : f32
    %19 = vector.broadcast %cst_7 : f32 to vector<8x128xf32>
    %20 = arith.maximumf %0, %19 : vector<8x128xf32>
    %21 = arith.mulf %0, %1 : vector<8x128xf32>
    %22 = arith.subf %20, %21 : vector<8x128xf32>
    %23 = math.log1p %5 : vector<8x128xf32>
    %24 = arith.addf %22, %23 : vector<8x128xf32>
    %cst_8 = arith.constant 0.000000e+00 : f32
    %25 = vector.broadcast %cst_8 : f32 to vector<1x32x128xf32>
    %c0_9 = arith.constant 0 : index
    %c0_10 = arith.constant 0 : index
    %c0_11 = arith.constant 0 : index
    %26 = vector.load %arg3[%c0_9, %c0_10, %c0_11] : memref<1x32x128xf32, #tpu.memory_space<vmem>>, vector<1x32x128xf32>
    tpu.vector_store %arg3[%c0_9, %c0_10, %c0_11], %25 {strides = array<i32>} : memref<1x32x128xf32, #tpu.memory_space<vmem>>, vector<1x32x128xf32>,
    %c0_i32 = arith.constant 0 : i32
    %27 = vector.broadcast %c0_i32 : i32 to vector<8x128xi32>
    %28 = arith.cmpi eq, %18, %27 : vector<8x128xi32>
    %cst_12 = arith.constant 1.000000e+00 : f32
    %cst_13 = arith.constant 0.000000e+00 : f32
    %29 = vector.broadcast %cst_12 : f32 to vector<8x128xf32>
    %30 = vector.broadcast %cst_13 : f32 to vector<8x128xf32>
    %31 = arith.select %28, %29, %30 : vector<8x128xi1>, vector<8x128xf32>
    %cst_14 = arith.constant dense<0.000000e+00> : vector<128xf32>
    %32 = vector.multi_reduction <add>, %31, %cst_14 [0] : vector<8x128xf32> to vector<128xf32>
    %33 = vector.shape_cast %32 : vector<128xf32> to vector<1x128xf32>
    %cst_15 = arith.constant 0.000000e+00 : f32
    %34 = vector.broadcast %cst_15 : f32 to vector<8x128xf32>
    %35 = arith.select %28, %24, %34 : vector<8x128xi1>, vector<8x128xf32>
    %cst_16 = arith.constant dense<0.000000e+00> : vector<128xf32>
    %36 = vector.multi_reduction <add>, %35, %cst_16 [0] : vector<8x128xf32> to vector<128xf32>
    %37 = vector.shape_cast %36 : vector<128xf32> to vector<1x128xf32>
    %c0_17 = arith.constant 0 : index
    %c0_18 = arith.constant 0 : index
    %c0_19 = arith.constant 0 : index
    %38 = vector.load %arg3[%c0_17, %c0_18, %c0_19] : memref<1x32x128xf32, #tpu.memory_space<vmem>>, vector<1x1x128xf32>
    %39 = vector.shape_cast %38 : vector<1x1x128xf32> to vector<1x128xf32>
    %40 = vector.shape_cast %33 : vector<1x128xf32> to vector<1x1x128xf32>
    tpu.vector_store %arg3[%c0_17, %c0_18, %c0_19], %40 {strides = array<i32>} : memref<1x32x128xf32, #tpu.memory_space<vmem>>, vector<1x1x128xf32>,
    %c0_20 = arith.constant 0 : index
    %c16 = arith.constant 16 : index
    %c0_21 = arith.constant 0 : index
    %41 = vector.load %arg3[%c0_20, %c16, %c0_21] : memref<1x32x128xf32, #tpu.memory_space<vmem>>, vector<1x1x128xf32>
    %42 = vector.shape_cast %41 : vector<1x1x128xf32> to vector<1x128xf32>
    %43 = vector.shape_cast %37 : vector<1x128xf32> to vector<1x1x128xf32>
    tpu.vector_store %arg3[%c0_20, %c16, %c0_21], %43 {strides = array<i32>} : memref<1x32x128xf32, #tpu.memory_space<vmem>>, vector<1x1x128xf32>,
    %c1_i32 = arith.constant 1 : i32
    %44 = vector.broadcast %c1_i32 : i32 to vector<8x128xi32>
    %45 = arith.cmpi eq, %18, %44 : vector<8x128xi32>
    %cst_22 = arith.constant 1.000000e+00 : f32
    %cst_23 = arith.constant 0.000000e+00 : f32
    %46 = vector.broadcast %cst_22 : f32 to vector<8x128xf32>
    %47 = vector.broadcast %cst_23 : f32 to vector<8x128xf32>
    %48 = arith.select %45, %46, %47 : vector<8x128xi1>, vector<8x128xf32>
    %cst_24 = arith.constant dense<0.000000e+00> : vector<128xf32>
    %49 = vector.multi_reduction <add>, %48, %cst_24 [0] : vector<8x128xf32> to vector<128xf32>
    %50 = vector.shape_cast %49 : vector<128xf32> to vector<1x128xf32>
    %cst_25 = arith.constant 0.000000e+00 : f32
    %51 = vector.broadcast %cst_25 : f32 to vector<8x128xf32>
    %52 = arith.select %45, %24, %51 : vector<8x128xi1>, vector<8x128xf32>
    %cst_26 = arith.constant dense<0.000000e+00> : vector<128xf32>
    %53 = vector.multi_reduction <add>, %52, %cst_26 [0] : vector<8x128xf32> to vector<128xf32>
    %54 = vector.shape_cast %53 : vector<128xf32> to vector<1x128xf32>
    %c0_27 = arith.constant 0 : index
    %c1 = arith.constant 1 : index
    %c0_28 = arith.constant 0 : index
    %55 = vector.load %arg3[%c0_27, %c1, %c0_28] : memref<1x32x128xf32, #tpu.memory_space<vmem>>, vector<1x1x128xf32>
    %56 = vector.shape_cast %55 : vector<1x1x128xf32> to vector<1x128xf32>
    %57 = vector.shape_cast %50 : vector<1x128xf32> to vector<1x1x128xf32>
    tpu.vector_store %arg3[%c0_27, %c1, %c0_28], %57 {strides = array<i32>} : memref<1x32x128xf32, #tpu.memory_space<vmem>>, vector<1x1x128xf32>,
    %c0_29 = arith.constant 0 : index
    %c17 = arith.constant 17 : index
    %c0_30 = arith.constant 0 : index
    %58 = vector.load %arg3[%c0_29, %c17, %c0_30] : memref<1x32x128xf32, #tpu.memory_space<vmem>>, vector<1x1x128xf32>
    %59 = vector.shape_cast %58 : vector<1x1x128xf32> to vector<1x128xf32>
    %60 = vector.shape_cast %54 : vector<1x128xf32> to vector<1x1x128xf32>
    tpu.vector_store %arg3[%c0_29, %c17, %c0_30], %60 {strides = array<i32>} : memref<1x32x128xf32, #tpu.memory_space<vmem>>, vector<1x1x128xf32>,
    %c2_i32 = arith.constant 2 : i32
    %61 = vector.broadcast %c2_i32 : i32 to vector<8x128xi32>
    %62 = arith.cmpi eq, %18, %61 : vector<8x128xi32>
    %cst_31 = arith.constant 1.000000e+00 : f32
    %cst_32 = arith.constant 0.000000e+00 : f32
    %63 = vector.broadcast %cst_31 : f32 to vector<8x128xf32>
    %64 = vector.broadcast %cst_32 : f32 to vector<8x128xf32>
    %65 = arith.select %62, %63, %64 : vector<8x128xi1>, vector<8x128xf32>
    %cst_33 = arith.constant dense<0.000000e+00> : vector<128xf32>
    %66 = vector.multi_reduction <add>, %65, %cst_33 [0] : vector<8x128xf32> to vector<128xf32>
    %67 = vector.shape_cast %66 : vector<128xf32> to vector<1x128xf32>
    %cst_34 = arith.constant 0.000000e+00 : f32
    %68 = vector.broadcast %cst_34 : f32 to vector<8x128xf32>
    %69 = arith.select %62, %24, %68 : vector<8x128xi1>, vector<8x128xf32>
    %cst_35 = arith.constant dense<0.000000e+00> : vector<128xf32>
    %70 = vector.multi_reduction <add>, %69, %cst_35 [0] : vector<8x128xf32> to vector<128xf32>
    %71 = vector.shape_cast %70 : vector<128xf32> to vector<1x128xf32>
    %c0_36 = arith.constant 0 : index
    %c2 = arith.constant 2 : index
    %c0_37 = arith.constant 0 : index
    %72 = vector.load %arg3[%c0_36, %c2, %c0_37] : memref<1x32x128xf32, #tpu.memory_space<vmem>>, vector<1x1x128xf32>
    %73 = vector.shape_cast %72 : vector<1x1x128xf32> to vector<1x128xf32>
    %74 = vector.shape_cast %67 : vector<1x128xf32> to vector<1x1x128xf32>
    tpu.vector_store %arg3[%c0_36, %c2, %c0_37], %74 {strides = array<i32>} : memref<1x32x128xf32, #tpu.memory_space<vmem>>, vector<1x1x128xf32>,
    %c0_38 = arith.constant 0 : index
    %c18 = arith.constant 18 : index
    %c0_39 = arith.constant 0 : index
    %75 = vector.load %arg3[%c0_38, %c18, %c0_39] : memref<1x32x128xf32, #tpu.memory_space<vmem>>, vector<1x1x128xf32>
    %76 = vector.shape_cast %75 : vector<1x1x128xf32> to vector<1x128xf32>
    %77 = vector.shape_cast %71 : vector<1x128xf32> to vector<1x1x128xf32>
    tpu.vector_store %arg3[%c0_38, %c18, %c0_39], %77 {strides = array<i32>} : memref<1x32x128xf32, #tpu.memory_space<vmem>>, vector<1x1x128xf32>,
    %c3_i32 = arith.constant 3 : i32
    %78 = vector.broadcast %c3_i32 : i32 to vector<8x128xi32>
    %79 = arith.cmpi eq, %18, %78 : vector<8x128xi32>
    %cst_40 = arith.constant 1.000000e+00 : f32
    %cst_41 = arith.constant 0.000000e+00 : f32
    %80 = vector.broadcast %cst_40 : f32 to vector<8x128xf32>
    %81 = vector.broadcast %cst_41 : f32 to vector<8x128xf32>
    %82 = arith.select %79, %80, %81 : vector<8x128xi1>, vector<8x128xf32>
    %cst_42 = arith.constant dense<0.000000e+00> : vector<128xf32>
    %83 = vector.multi_reduction <add>, %82, %cst_42 [0] : vector<8x128xf32> to vector<128xf32>
    %84 = vector.shape_cast %83 : vector<128xf32> to vector<1x128xf32>
    %cst_43 = arith.constant 0.000000e+00 : f32
    %85 = vector.broadcast %cst_43 : f32 to vector<8x128xf32>
    %86 = arith.select %79, %24, %85 : vector<8x128xi1>, vector<8x128xf32>
    %cst_44 = arith.constant dense<0.000000e+00> : vector<128xf32>
    %87 = vector.multi_reduction <add>, %86, %cst_44 [0] : vector<8x128xf32> to vector<128xf32>
    %88 = vector.shape_cast %87 : vector<128xf32> to vector<1x128xf32>
    %c0_45 = arith.constant 0 : index
    %c3 = arith.constant 3 : index
    %c0_46 = arith.constant 0 : index
    %89 = vector.load %arg3[%c0_45, %c3, %c0_46] : memref<1x32x128xf32, #tpu.memory_space<vmem>>, vector<1x1x128xf32>
    %90 = vector.shape_cast %89 : vector<1x1x128xf32> to vector<1x128xf32>
    %91 = vector.shape_cast %84 : vector<1x128xf32> to vector<1x1x128xf32>
    tpu.vector_store %arg3[%c0_45, %c3, %c0_46], %91 {strides = array<i32>} : memref<1x32x128xf32, #tpu.memory_space<vmem>>, vector<1x1x128xf32>,
    %c0_47 = arith.constant 0 : index
    %c19 = arith.constant 19 : index
    %c0_48 = arith.constant 0 : index
    %92 = vector.load %arg3[%c0_47, %c19, %c0_48] : memref<1x32x128xf32, #tpu.memory_space<vmem>>, vector<1x1x128xf32>
    %93 = vector.shape_cast %92 : vector<1x1x128xf32> to vector<1x128xf32>
    %94 = vector.shape_cast %88 : vector<1x128xf32> to vector<1x1x128xf32>
    tpu.vector_store %arg3[%c0_47, %c19, %c0_48], %94 {strides = array<i32>} : memref<1x32x128xf32, #tpu.memory_space<vmem>>, vector<1x1x128xf32>,
    %c4_i32 = arith.constant 4 : i32
    %95 = vector.broadcast %c4_i32 : i32 to vector<8x128xi32>
    %96 = arith.cmpi eq, %18, %95 : vector<8x128xi32>
    %cst_49 = arith.constant 1.000000e+00 : f32
    %cst_50 = arith.constant 0.000000e+00 : f32
    %97 = vector.broadcast %cst_49 : f32 to vector<8x128xf32>
    %98 = vector.broadcast %cst_50 : f32 to vector<8x128xf32>
    %99 = arith.select %96, %97, %98 : vector<8x128xi1>, vector<8x128xf32>
    %cst_51 = arith.constant dense<0.000000e+00> : vector<128xf32>
    %100 = vector.multi_reduction <add>, %99, %cst_51 [0] : vector<8x128xf32> to vector<128xf32>
    %101 = vector.shape_cast %100 : vector<128xf32> to vector<1x128xf32>
    %cst_52 = arith.constant 0.000000e+00 : f32
    %102 = vector.broadcast %cst_52 : f32 to vector<8x128xf32>
    %103 = arith.select %96, %24, %102 : vector<8x128xi1>, vector<8x128xf32>
    %cst_53 = arith.constant dense<0.000000e+00> : vector<128xf32>
    %104 = vector.multi_reduction <add>, %103, %cst_53 [0] : vector<8x128xf32> to vector<128xf32>
    %105 = vector.shape_cast %104 : vector<128xf32> to vector<1x128xf32>
    %c0_54 = arith.constant 0 : index
    %c4 = arith.constant 4 : index
    %c0_55 = arith.constant 0 : index
    %106 = vector.load %arg3[%c0_54, %c4, %c0_55] : memref<1x32x128xf32, #tpu.memory_space<vmem>>, vector<1x1x128xf32>
    %107 = vector.shape_cast %106 : vector<1x1x128xf32> to vector<1x128xf32>
    %108 = vector.shape_cast %101 : vector<1x128xf32> to vector<1x1x128xf32>
    tpu.vector_store %arg3[%c0_54, %c4, %c0_55], %108 {strides = array<i32>} : memref<1x32x128xf32, #tpu.memory_space<vmem>>, vector<1x1x128xf32>,
    %c0_56 = arith.constant 0 : index
    %c20 = arith.constant 20 : index
    %c0_57 = arith.constant 0 : index
    %109 = vector.load %arg3[%c0_56, %c20, %c0_57] : memref<1x32x128xf32, #tpu.memory_space<vmem>>, vector<1x1x128xf32>
    %110 = vector.shape_cast %109 : vector<1x1x128xf32> to vector<1x128xf32>
    %111 = vector.shape_cast %105 : vector<1x128xf32> to vector<1x1x128xf32>
    tpu.vector_store %arg3[%c0_56, %c20, %c0_57], %111 {strides = array<i32>} : memref<1x32x128xf32, #tpu.memory_space<vmem>>, vector<1x1x128xf32>,
    %c5_i32 = arith.constant 5 : i32
    %112 = vector.broadcast %c5_i32 : i32 to vector<8x128xi32>
    %113 = arith.cmpi eq, %18, %112 : vector<8x128xi32>
    %cst_58 = arith.constant 1.000000e+00 : f32
    %cst_59 = arith.constant 0.000000e+00 : f32
    %114 = vector.broadcast %cst_58 : f32 to vector<8x128xf32>
    %115 = vector.broadcast %cst_59 : f32 to vector<8x128xf32>
    %116 = arith.select %113, %114, %115 : vector<8x128xi1>, vector<8x128xf32>
    %cst_60 = arith.constant dense<0.000000e+00> : vector<128xf32>
    %117 = vector.multi_reduction <add>, %116, %cst_60 [0] : vector<8x128xf32> to vector<128xf32>
    %118 = vector.shape_cast %117 : vector<128xf32> to vector<1x128xf32>
    %cst_61 = arith.constant 0.000000e+00 : f32
    %119 = vector.broadcast %cst_61 : f32 to vector<8x128xf32>
    %120 = arith.select %113, %24, %119 : vector<8x128xi1>, vector<8x128xf32>
    %cst_62 = arith.constant dense<0.000000e+00> : vector<128xf32>
    %121 = vector.multi_reduction <add>, %120, %cst_62 [0] : vector<8x128xf32> to vector<128xf32>
    %122 = vector.shape_cast %121 : vector<128xf32> to vector<1x128xf32>
    %c0_63 = arith.constant 0 : index
    %c5 = arith.constant 5 : index
    %c0_64 = arith.constant 0 : index
    %123 = vector.load %arg3[%c0_63, %c5, %c0_64] : memref<1x32x128xf32, #tpu.memory_space<vmem>>, vector<1x1x128xf32>
    %124 = vector.shape_cast %123 : vector<1x1x128xf32> to vector<1x128xf32>
    %125 = vector.shape_cast %118 : vector<1x128xf32> to vector<1x1x128xf32>
    tpu.vector_store %arg3[%c0_63, %c5, %c0_64], %125 {strides = array<i32>} : memref<1x32x128xf32, #tpu.memory_space<vmem>>, vector<1x1x128xf32>,
    %c0_65 = arith.constant 0 : index
    %c21 = arith.constant 21 : index
    %c0_66 = arith.constant 0 : index
    %126 = vector.load %arg3[%c0_65, %c21, %c0_66] : memref<1x32x128xf32, #tpu.memory_space<vmem>>, vector<1x1x128xf32>
    %127 = vector.shape_cast %126 : vector<1x1x128xf32> to vector<1x128xf32>
    %128 = vector.shape_cast %122 : vector<1x128xf32> to vector<1x1x128xf32>
    tpu.vector_store %arg3[%c0_65, %c21, %c0_66], %128 {strides = array<i32>} : memref<1x32x128xf32, #tpu.memory_space<vmem>>, vector<1x1x128xf32>,
    %c6_i32 = arith.constant 6 : i32
    %129 = vector.broadcast %c6_i32 : i32 to vector<8x128xi32>
    %130 = arith.cmpi eq, %18, %129 : vector<8x128xi32>
    %cst_67 = arith.constant 1.000000e+00 : f32
    %cst_68 = arith.constant 0.000000e+00 : f32
    %131 = vector.broadcast %cst_67 : f32 to vector<8x128xf32>
    %132 = vector.broadcast %cst_68 : f32 to vector<8x128xf32>
    %133 = arith.select %130, %131, %132 : vector<8x128xi1>, vector<8x128xf32>
    %cst_69 = arith.constant dense<0.000000e+00> : vector<128xf32>
    %134 = vector.multi_reduction <add>, %133, %cst_69 [0] : vector<8x128xf32> to vector<128xf32>
    %135 = vector.shape_cast %134 : vector<128xf32> to vector<1x128xf32>
    %cst_70 = arith.constant 0.000000e+00 : f32
    %136 = vector.broadcast %cst_70 : f32 to vector<8x128xf32>
    %137 = arith.select %130, %24, %136 : vector<8x128xi1>, vector<8x128xf32>
    %cst_71 = arith.constant dense<0.000000e+00> : vector<128xf32>
    %138 = vector.multi_reduction <add>, %137, %cst_71 [0] : vector<8x128xf32> to vector<128xf32>
    %139 = vector.shape_cast %138 : vector<128xf32> to vector<1x128xf32>
    %c0_72 = arith.constant 0 : index
    %c6 = arith.constant 6 : index
    %c0_73 = arith.constant 0 : index
    %140 = vector.load %arg3[%c0_72, %c6, %c0_73] : memref<1x32x128xf32, #tpu.memory_space<vmem>>, vector<1x1x128xf32>
    %141 = vector.shape_cast %140 : vector<1x1x128xf32> to vector<1x128xf32>
    %142 = vector.shape_cast %135 : vector<1x128xf32> to vector<1x1x128xf32>
    tpu.vector_store %arg3[%c0_72, %c6, %c0_73], %142 {strides = array<i32>} : memref<1x32x128xf32, #tpu.memory_space<vmem>>, vector<1x1x128xf32>,
    %c0_74 = arith.constant 0 : index
    %c22 = arith.constant 22 : index
    %c0_75 = arith.constant 0 : index
    %143 = vector.load %arg3[%c0_74, %c22, %c0_75] : memref<1x32x128xf32, #tpu.memory_space<vmem>>, vector<1x1x128xf32>
    %144 = vector.shape_cast %143 : vector<1x1x128xf32> to vector<1x128xf32>
    %145 = vector.shape_cast %139 : vector<1x128xf32> to vector<1x1x128xf32>
    tpu.vector_store %arg3[%c0_74, %c22, %c0_75], %145 {strides = array<i32>} : memref<1x32x128xf32, #tpu.memory_space<vmem>>, vector<1x1x128xf32>,
    %c7_i32 = arith.constant 7 : i32
    %146 = vector.broadcast %c7_i32 : i32 to vector<8x128xi32>
    %147 = arith.cmpi eq, %18, %146 : vector<8x128xi32>
    %cst_76 = arith.constant 1.000000e+00 : f32
    %cst_77 = arith.constant 0.000000e+00 : f32
    %148 = vector.broadcast %cst_76 : f32 to vector<8x128xf32>
    %149 = vector.broadcast %cst_77 : f32 to vector<8x128xf32>
    %150 = arith.select %147, %148, %149 : vector<8x128xi1>, vector<8x128xf32>
    %cst_78 = arith.constant dense<0.000000e+00> : vector<128xf32>
    %151 = vector.multi_reduction <add>, %150, %cst_78 [0] : vector<8x128xf32> to vector<128xf32>
    %152 = vector.shape_cast %151 : vector<128xf32> to vector<1x128xf32>
    %cst_79 = arith.constant 0.000000e+00 : f32
    %153 = vector.broadcast %cst_79 : f32 to vector<8x128xf32>
    %154 = arith.select %147, %24, %153 : vector<8x128xi1>, vector<8x128xf32>
    %cst_80 = arith.constant dense<0.000000e+00> : vector<128xf32>
    %155 = vector.multi_reduction <add>, %154, %cst_80 [0] : vector<8x128xf32> to vector<128xf32>
    %156 = vector.shape_cast %155 : vector<128xf32> to vector<1x128xf32>
    %c0_81 = arith.constant 0 : index
    %c7 = arith.constant 7 : index
    %c0_82 = arith.constant 0 : index
    %157 = vector.load %arg3[%c0_81, %c7, %c0_82] : memref<1x32x128xf32, #tpu.memory_space<vmem>>, vector<1x1x128xf32>
    %158 = vector.shape_cast %157 : vector<1x1x128xf32> to vector<1x128xf32>
    %159 = vector.shape_cast %152 : vector<1x128xf32> to vector<1x1x128xf32>
    tpu.vector_store %arg3[%c0_81, %c7, %c0_82], %159 {strides = array<i32>} : memref<1x32x128xf32, #tpu.memory_space<vmem>>, vector<1x1x128xf32>,
    %c0_83 = arith.constant 0 : index
    %c23 = arith.constant 23 : index
    %c0_84 = arith.constant 0 : index
    %160 = vector.load %arg3[%c0_83, %c23, %c0_84] : memref<1x32x128xf32, #tpu.memory_space<vmem>>, vector<1x1x128xf32>
    %161 = vector.shape_cast %160 : vector<1x1x128xf32> to vector<1x128xf32>
    %162 = vector.shape_cast %156 : vector<1x128xf32> to vector<1x1x128xf32>
    tpu.vector_store %arg3[%c0_83, %c23, %c0_84], %162 {strides = array<i32>} : memref<1x32x128xf32, #tpu.memory_space<vmem>>, vector<1x1x128xf32>,
    %c8_i32 = arith.constant 8 : i32
    %163 = vector.broadcast %c8_i32 : i32 to vector<8x128xi32>
    %164 = arith.cmpi eq, %18, %163 : vector<8x128xi32>
    %cst_85 = arith.constant 1.000000e+00 : f32
    %cst_86 = arith.constant 0.000000e+00 : f32
    %165 = vector.broadcast %cst_85 : f32 to vector<8x128xf32>
    %166 = vector.broadcast %cst_86 : f32 to vector<8x128xf32>
    %167 = arith.select %164, %165, %166 : vector<8x128xi1>, vector<8x128xf32>
    %cst_87 = arith.constant dense<0.000000e+00> : vector<128xf32>
    %168 = vector.multi_reduction <add>, %167, %cst_87 [0] : vector<8x128xf32> to vector<128xf32>
    %169 = vector.shape_cast %168 : vector<128xf32> to vector<1x128xf32>
    %cst_88 = arith.constant 0.000000e+00 : f32
    %170 = vector.broadcast %cst_88 : f32 to vector<8x128xf32>
    %171 = arith.select %164, %24, %170 : vector<8x128xi1>, vector<8x128xf32>
    %cst_89 = arith.constant dense<0.000000e+00> : vector<128xf32>
    %172 = vector.multi_reduction <add>, %171, %cst_89 [0] : vector<8x128xf32> to vector<128xf32>
    %173 = vector.shape_cast %172 : vector<128xf32> to vector<1x128xf32>
    %c0_90 = arith.constant 0 : index
    %c8 = arith.constant 8 : index
    %c0_91 = arith.constant 0 : index
    %174 = vector.load %arg3[%c0_90, %c8, %c0_91] : memref<1x32x128xf32, #tpu.memory_space<vmem>>, vector<1x1x128xf32>
    %175 = vector.shape_cast %174 : vector<1x1x128xf32> to vector<1x128xf32>
    %176 = vector.shape_cast %169 : vector<1x128xf32> to vector<1x1x128xf32>
    tpu.vector_store %arg3[%c0_90, %c8, %c0_91], %176 {strides = array<i32>} : memref<1x32x128xf32, #tpu.memory_space<vmem>>, vector<1x1x128xf32>,
    %c0_92 = arith.constant 0 : index
    %c24 = arith.constant 24 : index
    %c0_93 = arith.constant 0 : index
    %177 = vector.load %arg3[%c0_92, %c24, %c0_93] : memref<1x32x128xf32, #tpu.memory_space<vmem>>, vector<1x1x128xf32>
    %178 = vector.shape_cast %177 : vector<1x1x128xf32> to vector<1x128xf32>
    %179 = vector.shape_cast %173 : vector<1x128xf32> to vector<1x1x128xf32>
    tpu.vector_store %arg3[%c0_92, %c24, %c0_93], %179 {strides = array<i32>} : memref<1x32x128xf32, #tpu.memory_space<vmem>>, vector<1x1x128xf32>,
    %c9_i32 = arith.constant 9 : i32
    %180 = vector.broadcast %c9_i32 : i32 to vector<8x128xi32>
    %181 = arith.cmpi eq, %18, %180 : vector<8x128xi32>
    %cst_94 = arith.constant 1.000000e+00 : f32
    %cst_95 = arith.constant 0.000000e+00 : f32
    %182 = vector.broadcast %cst_94 : f32 to vector<8x128xf32>
    %183 = vector.broadcast %cst_95 : f32 to vector<8x128xf32>
    %184 = arith.select %181, %182, %183 : vector<8x128xi1>, vector<8x128xf32>
    %cst_96 = arith.constant dense<0.000000e+00> : vector<128xf32>
    %185 = vector.multi_reduction <add>, %184, %cst_96 [0] : vector<8x128xf32> to vector<128xf32>
    %186 = vector.shape_cast %185 : vector<128xf32> to vector<1x128xf32>
    %cst_97 = arith.constant 0.000000e+00 : f32
    %187 = vector.broadcast %cst_97 : f32 to vector<8x128xf32>
    %188 = arith.select %181, %24, %187 : vector<8x128xi1>, vector<8x128xf32>
    %cst_98 = arith.constant dense<0.000000e+00> : vector<128xf32>
    %189 = vector.multi_reduction <add>, %188, %cst_98 [0] : vector<8x128xf32> to vector<128xf32>
    %190 = vector.shape_cast %189 : vector<128xf32> to vector<1x128xf32>
    %c0_99 = arith.constant 0 : index
    %c9 = arith.constant 9 : index
    %c0_100 = arith.constant 0 : index
    %191 = vector.load %arg3[%c0_99, %c9, %c0_100] : memref<1x32x128xf32, #tpu.memory_space<vmem>>, vector<1x1x128xf32>
    %192 = vector.shape_cast %191 : vector<1x1x128xf32> to vector<1x128xf32>
    %193 = vector.shape_cast %186 : vector<1x128xf32> to vector<1x1x128xf32>
    tpu.vector_store %arg3[%c0_99, %c9, %c0_100], %193 {strides = array<i32>} : memref<1x32x128xf32, #tpu.memory_space<vmem>>, vector<1x1x128xf32>,
    %c0_101 = arith.constant 0 : index
    %c25 = arith.constant 25 : index
    %c0_102 = arith.constant 0 : index
    %194 = vector.load %arg3[%c0_101, %c25, %c0_102] : memref<1x32x128xf32, #tpu.memory_space<vmem>>, vector<1x1x128xf32>
    %195 = vector.shape_cast %194 : vector<1x1x128xf32> to vector<1x128xf32>
    %196 = vector.shape_cast %190 : vector<1x128xf32> to vector<1x1x128xf32>
    tpu.vector_store %arg3[%c0_101, %c25, %c0_102], %196 {strides = array<i32>} : memref<1x32x128xf32, #tpu.memory_space<vmem>>, vector<1x1x128xf32>,
    return
  }
  func.func @transform_0(%arg0: i32) -> (i32, i32) {
    %c0_i32 = arith.constant 0 : i32
    %c0_i32_0 = arith.constant 0 : i32
    return %arg0, %c0_i32 : i32, i32
  }
  func.func @transform_1(%arg0: i32) -> (i32, i32) {
    %c0_i32 = arith.constant 0 : i32
    %c0_i32_0 = arith.constant 0 : i32
    return %arg0, %c0_i32 : i32, i32
  }
  func.func @transform_2(%arg0: i32) -> (i32, i32, i32) {
    %c0_i32 = arith.constant 0 : i32
    %c0_i32_0 = arith.constant 0 : i32
    %c0_i32_1 = arith.constant 0 : i32
    return %arg0, %c0_i32, %c0_i32_0 : i32, i32, i32
  }
}

</mosaic_0001>

<bundles_post_ra>
// kernel: tpu_custom_call.1
= control target key start
LH: loop header
LB: loop body
LE: loop exit
PB: predicated region body
PF: predicated region fallthrough
CT: control target
= control target key end

     0   :  { %7 = vsyncpa [#allocation3], 0  ;;  %s446_s0 = inlined_call_operand.hbm [shape: f32[8,128], index: 0, kind: input, shape index: {}]   ;;  %s447_s1 = inlined_call_operand.hbm [shape: f32[8,128], index: 1, kind: input, shape index: {}]   ;;  %s448_s2 = inlined_call_operand.hbm [shape: f32[1,32,128], index: 2, kind: output, shape index: {}]  }
   0x1   :  { %8 = vsyncpa [#allocation6], 0 }
   0x2   :  { %9 = vsyncpa [#allocation4], 0  ;;  %s343_s9 = smov [#allocation2]   ;;  %s344_s11 = smov [#allocation5]  }
   0x3   :  { %s16_s10 = sshll.u32 %s343_s9, 4  ;;  %s26_s12 = sshll.u32 %s344_s11, 4  ;;  %s17_s10 = int_to_ptr.vmem [resolvable:$true] %s16_s10  ;;  %s27_s12 = int_to_ptr.vmem [resolvable:$true] %s26_s12 }
   0x4   :  { %s271_s15 = scalar_lea.hbm %s446_s0, 128 }
   0x5   :  { %p272_p0 = scmp.ne.s32.totalorder %s446_s0, %s271_s15  ;;  %p275_p1 = scmp.lt.u32.totalorder %s271_s15, %s446_s0 }
   0x7   :  { %p277_p2 = pnand %p275_p1, %p272_p0 }
   0x9   :  { %280 = shalt.err (!%p277_p2)
}
   0xa   :  { %s281_s20 = scalar_lea.vmem %s17_s10, 128  ;;  %p286_p4 = scmp.lt.s32.totalorder %s17_s10, %s17_s10 }
   0xb   :  { %p282_p3 = scmp.ne.s32.totalorder %s17_s10, %s281_s20  ;;  %p287_p5 = scmp.lt.s32.totalorder %s281_s20, %s281_s20 }
   0xd   :  { %p288_p6 = por %p287_p5, %p286_p4 }
   0xf   :  { %p289_p7 = pnand %p288_p6, %p282_p3 }
  0x11   :  { %292 = shalt.err (!%p289_p7)
}
  0x12   :  { %19 = dma.hbm_to_vmem [thread:$0]  %s446_s0, 128, %s17_s10, [#allocation3]  }
  0x13   :  { %s293_s25 = scalar_lea.hbm %s447_s1, 128 }
  0x14   :  { %p294_p8 = scmp.ne.s32.totalorder %s447_s1, %s293_s25  ;;  %p297_p9 = scmp.lt.u32.totalorder %s293_s25, %s447_s1 }
  0x16   :  { %p299_p10 = pnand %p297_p9, %p294_p8 }
  0x18   :  { %302 = shalt.err (!%p299_p10)
}
  0x19   :  { %s303_s30 = scalar_lea.vmem %s27_s12, 128  ;;  %p308_p12 = scmp.lt.s32.totalorder %s27_s12, %s27_s12 }
  0x1a   :  { %p304_p11 = scmp.ne.s32.totalorder %s27_s12, %s303_s30  ;;  %p309_p13 = scmp.lt.s32.totalorder %s303_s30, %s303_s30 }
  0x1c   :  { %p310_p0 = por %p309_p13, %p308_p12 }
  0x1e   :  { %p311_p1 = pnand %p310_p0, %p304_p11 }
  0x20   :  { %314 = shalt.err (!%p311_p1)
}
  0x21   :  { %29 = dma.hbm_to_vmem [thread:$0]  %s447_s1, 128, %s27_s12, [#allocation6]  }
  0x22   :  { %337 = dma.done.wait [#allocation3], 128  }
  0x23   :  { %338 = vsyncadd [#allocation3], 4294967168 }
  0x24   :  { %339 = dma.done.wait [#allocation6], 128  }
  0x25   :  { %340 = vsyncadd [#allocation6], 4294967168  ;;  %v345_v0 = vmov 0.0   ;;  %v36_v1 = vld [vmem:[#allocation2] sm:$0xff]  ;;  %v37_v11 = vld [vmem:[#allocation5] sm:$0xff]  ;;  %s346_s1 = smov [#allocation7]  }
  0x26   :  { %65 = vst [vmem:[#allocation7] sm:$0xff] %v345_v0  ;;  %66 = vst [vmem:[#allocation7 + $0x8] sm:$0xff] %v345_v0  ;;  %v38_v2 = vand.u32 2147483647, %v36_v1  ;;  %vm45_vm0 = vcmp.ge.f32.partialorder %v36_v1, 0.0  ;;  %v52_v15 = vmax.f32 %v36_v1, 0.0  ;;  %v53_v16 = vmul.f32 %v37_v11, %v36_v1 }
  0x27   :  { %67 = vst [vmem:[#allocation7 + $0x10] sm:$0xff] %v345_v0  ;;  %68 = vst [vmem:[#allocation7 + $0x18] sm:$0xff] %v345_v0  ;;  %s244_s4 = sshll.u32 %s346_s1, 4  ;;  %s245_s4 = int_to_ptr.vmem [resolvable:$true] %s244_s4 }
  0x28   :  { %v39_v3 = vsub.f32 0.0, %v38_v2  ;;  %v54_v21 = vsub.f32 %v52_v15, %v53_v16  ;;  %s315_s5 = scalar_lea.vmem %s245_s4, 512  ;;  %p320_p3 = scmp.lt.s32.totalorder %s245_s4, %s245_s4 }
  0x29   :  { %p316_p2 = scmp.ne.s32.totalorder %s245_s4, %s315_s5  ;;  %p321_p4 = scmp.lt.s32.totalorder %s315_s5, %s315_s5 }
  0x2a   :  { %v40_v4 = vmul.f32 1.442695, %v39_v3 }
  0x2b   :  { %p322_p5 = por %p321_p4, %p320_p3 }
  0x2c   :  { %265 = vpow2.f32 %v40_v4 }
  0x2d   :  { %p323_p6 = pnand %p322_p5, %p316_p2 }
  0x36   :  { %v266_v5 = vpop.eup %265 }
  0x37   :  { %v42_v6 = vadd.f32 1.0, %v266_v5  ;;  %v58_v7 = vmul.f32 -0.5, %v266_v5  ;;  %v61_v13 = vand.u32 2147483647, %v266_v5 }
  0x39   :  { %267 = vrcp.f32 %v42_v6  ;;  %v59_v9 = vadd.f32 1.0, %v58_v7  ;;  %vm62_vm1 = vcmp.lt.f32.partialorder %v61_v13, 0.0004427343 }
  0x3a   :  { %269 = vlog2.f32 %v42_v6 }
  0x3b   :  { %v60_v19 = vmul.f32 %v266_v5, %v59_v9 }
  0x43   :  { %v268_v8 = vpop.eup %267 }
  0x44   :  { %v270_v10 = vpop.eup %269  ;;  %v46_v12 = vmul.f32 %v268_v8, %v266_v5 }
  0x45   :  { %v57_v18 = vmul.f32 0.6931472, %v270_v10 }
  0x46   :  { %v47_v14 = vsel %vm45_vm0, %v268_v8, %v46_v12 }
  0x47   :  { %v48_v17 = vsub.f32 %v47_v14, %v37_v11  ;;  %v63_v23 = vsel %vm62_vm1, %v60_v19, %v57_v18 }
  0x48   :  { %v392_v25 = vadd.f32 %v63_v23, %v54_v21 }
  0x49   :  { %v49_v20 = vand.u32 2147483647, %v48_v17 }
  0x4b   :  { %v50_v22 = vmul.f32 9.9999, %v49_v20 }
  0x4d   :  { %v257_v24 = vtrunc.f32 %v50_v22 }
  0x4f   :  { %v394_v26 = vcvt.f32.s32 %v257_v24 }
  0x51   :  { %vm69_vm2 = vcmp.eq.s32.totalorder %v394_v26, 0  ;;  %vm86_vm3 = vcmp.eq.s32.totalorder %v394_v26, 1  ;;  %vm103_vm4 = vcmp.eq.s32.totalorder %v394_v26, 2  ;;  %vm120_vm5 = vcmp.eq.s32.totalorder %v394_v26, 3 }
  0x52   :  { %v70_v27 = vsel %vm69_vm2, 1.0, %v345_v0  ;;  %v77_v28 = vsel %vm69_vm2, %v392_v25, 0.0  ;;  %v87_v29 = vsel %vm86_vm3, 1.0, %v345_v0  ;;  %v94_v30 = vsel %vm86_vm3, %v392_v25, 0.0 }
  0x53   :  { %v71_v31 = vrot.slane %v70_v27, 4  ;;  %v78_v32 = vrot.slane %v77_v28, 4  ;;  %v88_v33 = vrot.slane %v87_v29, 4  ;;  %v95_v34 = vrot.slane %v94_v30, 4 }
  0x54   :  { %v104_v35 = vsel %vm103_vm4, 1.0, %v345_v0  ;;  %v111_v36 = vsel %vm103_vm4, %v392_v25, 0.0  ;;  %v121_v37 = vsel %vm120_vm5, 1.0, %v345_v0  ;;  %v128_v38 = vsel %vm120_vm5, %v392_v25, 0.0 }
  0x55   :  { %v72_v39 = vadd.f32 %v71_v31, %v70_v27  ;;  %v79_v40 = vadd.f32 %v78_v32, %v77_v28  ;;  %v89_v41 = vadd.f32 %v88_v33, %v87_v29  ;;  %v96_v42 = vadd.f32 %v95_v34, %v94_v30 }
  0x56   :  { %v105_v43 = vrot.slane %v104_v35, 4  ;;  %v112_v44 = vrot.slane %v111_v36, 4  ;;  %v122_v45 = vrot.slane %v121_v37, 4  ;;  %v129_v46 = vrot.slane %v128_v38, 4 }
  0x57   :  { %v73_v47 = vrot.slane %v72_v39, 2  ;;  %v80_v48 = vrot.slane %v79_v40, 2  ;;  %v90_v49 = vrot.slane %v89_v41, 2  ;;  %v97_v50 = vrot.slane %v96_v42, 2 }
  0x58   :  { %v106_v51 = vadd.f32 %v105_v43, %v104_v35  ;;  %v113_v52 = vadd.f32 %v112_v44, %v111_v36  ;;  %v123_v53 = vadd.f32 %v122_v45, %v121_v37  ;;  %v130_v54 = vadd.f32 %v129_v46, %v128_v38 }
  0x59   :  { %v74_v55 = vadd.f32 %v73_v47, %v72_v39  ;;  %v81_v56 = vadd.f32 %v80_v48, %v79_v40  ;;  %v91_v57 = vadd.f32 %v90_v49, %v89_v41  ;;  %v98_v58 = vadd.f32 %v97_v50, %v96_v42 }
  0x5a   :  { %v107_v59 = vrot.slane %v106_v51, 2  ;;  %v114_v60 = vrot.slane %v113_v52, 2  ;;  %v124_v61 = vrot.slane %v123_v53, 2  ;;  %v131_v62 = vrot.slane %v130_v54, 2 }
  0x5b   :  { %v75_v63 = vrot.slane %v74_v55, 1  ;;  %v82_v1 = vrot.slane %v81_v56, 1  ;;  %v92_v2 = vrot.slane %v91_v57, 1  ;;  %v99_v3 = vrot.slane %v98_v58, 1 }
  0x5c   :  { %v108_v4 = vadd.f32 %v107_v59, %v106_v51  ;;  %v115_v5 = vadd.f32 %v114_v60, %v113_v52  ;;  %v125_v6 = vadd.f32 %v124_v61, %v123_v53  ;;  %v132_v7 = vadd.f32 %v131_v62, %v130_v54 }
  0x5d   :  { %v76_v8 = vadd.f32 %v75_v63, %v74_v55  ;;  %v83_v9 = vadd.f32 %v82_v1, %v81_v56  ;;  %v93_v10 = vadd.f32 %v92_v2, %v91_v57  ;;  %v100_v11 = vadd.f32 %v99_v3, %v98_v58 }
  0x5e   :  { %v109_v12 = vrot.slane %v108_v4, 1  ;;  %v116_v13 = vrot.slane %v115_v5, 1  ;;  %v126_v14 = vrot.slane %v125_v6, 1  ;;  %v133_v15 = vrot.slane %v132_v7, 1 }
  0x5f   :  { %84 = vst [vmem:[#allocation7] sm:$0x1] %v76_v8  ;;  %85 = vst [vmem:[#allocation7 + $0x10] sm:$0x1] %v83_v9  ;;  %vm137_vm6 = vcmp.eq.s32.totalorder %v394_v26, 4  ;;  %vm154_vm7 = vcmp.eq.s32.totalorder %v394_v26, 5 }
  0x60   :  { %101 = vst [vmem:[#allocation7 + $0x1] sm:$0x1] %v93_v10  ;;  %102 = vst [vmem:[#allocation7 + $0x11] sm:$0x1] %v100_v11  ;;  %vm171_vm8 = vcmp.eq.s32.totalorder %v394_v26, 6  ;;  %vm188_vm9 = vcmp.eq.s32.totalorder %v394_v26, 7  ;;  %v110_v16 = vadd.f32 %v109_v12, %v108_v4  ;;  %v117_v17 = vadd.f32 %v116_v13, %v115_v5 }
  0x61   :  { %v127_v18 = vadd.f32 %v126_v14, %v125_v6  ;;  %v134_v19 = vadd.f32 %v133_v15, %v132_v7  ;;  %v138_v20 = vsel %vm137_vm6, 1.0, %v345_v0  ;;  %v145_v21 = vsel %vm137_vm6, %v392_v25, 0.0 }
  0x62   :  { %v155_v22 = vsel %vm154_vm7, 1.0, %v345_v0  ;;  %v162_v23 = vsel %vm154_vm7, %v392_v25, 0.0  ;;  %118 = vst [vmem:[#allocation7 + $0x2] sm:$0x1] %v110_v16  ;;  %119 = vst [vmem:[#allocation7 + $0x12] sm:$0x1] %v117_v17 }
  0x63   :  { %135 = vst [vmem:[#allocation7 + $0x3] sm:$0x1] %v127_v18  ;;  %136 = vst [vmem:[#allocation7 + $0x13] sm:$0x1] %v134_v19  ;;  %v139_v24 = vrot.slane %v138_v20, 4  ;;  %v146_v27 = vrot.slane %v145_v21, 4 }
  0x64   :  { %v156_v28 = vrot.slane %v155_v22, 4  ;;  %v163_v29 = vrot.slane %v162_v23, 4  ;;  %v172_v30 = vsel %vm171_vm8, 1.0, %v345_v0  ;;  %v179_v31 = vsel %vm171_vm8, %v392_v25, 0.0 }
  0x65   :  { %v189_v32 = vsel %vm188_vm9, 1.0, %v345_v0  ;;  %v196_v33 = vsel %vm188_vm9, %v392_v25, 0.0  ;;  %v140_v34 = vadd.f32 %v139_v24, %v138_v20  ;;  %v147_v35 = vadd.f32 %v146_v27, %v145_v21 }
  0x66   :  { %v157_v36 = vadd.f32 %v156_v28, %v155_v22  ;;  %v164_v37 = vadd.f32 %v163_v29, %v162_v23  ;;  %v173_v38 = vrot.slane %v172_v30, 4  ;;  %v180_v39 = vrot.slane %v179_v31, 4 }
  0x67   :  { %v190_v40 = vrot.slane %v189_v32, 4  ;;  %v197_v41 = vrot.slane %v196_v33, 4  ;;  %v141_v42 = vrot.slane %v140_v34, 2  ;;  %v148_v43 = vrot.slane %v147_v35, 2 }
  0x68   :  { %v158_v44 = vrot.slane %v157_v36, 2  ;;  %v165_v45 = vrot.slane %v164_v37, 2  ;;  %v174_v46 = vadd.f32 %v173_v38, %v172_v30  ;;  %v181_v47 = vadd.f32 %v180_v39, %v179_v31 }
  0x69   :  { %v191_v48 = vadd.f32 %v190_v40, %v189_v32  ;;  %v198_v49 = vadd.f32 %v197_v41, %v196_v33  ;;  %v142_v50 = vadd.f32 %v141_v42, %v140_v34  ;;  %v149_v51 = vadd.f32 %v148_v43, %v147_v35 }
  0x6a   :  { %v159_v52 = vadd.f32 %v158_v44, %v157_v36  ;;  %v166_v53 = vadd.f32 %v165_v45, %v164_v37  ;;  %v175_v54 = vrot.slane %v174_v46, 2  ;;  %v182_v55 = vrot.slane %v181_v47, 2 }
  0x6b   :  { %v192_v56 = vrot.slane %v191_v48, 2  ;;  %v199_v57 = vrot.slane %v198_v49, 2  ;;  %v143_v58 = vrot.slane %v142_v50, 1  ;;  %v150_v59 = vrot.slane %v149_v51, 1 }
  0x6c   :  { %v160_v60 = vrot.slane %v159_v52, 1  ;;  %v167_v61 = vrot.slane %v166_v53, 1  ;;  %v176_v62 = vadd.f32 %v175_v54, %v174_v46  ;;  %v183_v63 = vadd.f32 %v182_v55, %v181_v47 }
  0x6d   :  { %v193_v1 = vadd.f32 %v192_v56, %v191_v48  ;;  %v200_v2 = vadd.f32 %v199_v57, %v198_v49  ;;  %v144_v3 = vadd.f32 %v143_v58, %v142_v50  ;;  %v151_v4 = vadd.f32 %v150_v59, %v149_v51 }
  0x6e   :  { %v161_v5 = vadd.f32 %v160_v60, %v159_v52  ;;  %v168_v6 = vadd.f32 %v167_v61, %v166_v53  ;;  %v177_v7 = vrot.slane %v176_v62, 1  ;;  %v184_v8 = vrot.slane %v183_v63, 1 }
  0x6f   :  { %v194_v9 = vrot.slane %v193_v1, 1  ;;  %v201_v10 = vrot.slane %v200_v2, 1  ;;  %152 = vst [vmem:[#allocation7 + $0x4] sm:$0x1] %v144_v3  ;;  %153 = vst [vmem:[#allocation7 + $0x14] sm:$0x1] %v151_v4 }
  0x70   :  { %169 = vst [vmem:[#allocation7 + $0x5] sm:$0x1] %v161_v5  ;;  %170 = vst [vmem:[#allocation7 + $0x15] sm:$0x1] %v168_v6  ;;  %vm205_vm10 = vcmp.eq.s32.totalorder %v394_v26, 8  ;;  %vm222_vm11 = vcmp.eq.s32.totalorder %v394_v26, 9  ;;  %v178_v11 = vadd.f32 %v177_v7, %v176_v62  ;;  %v185_v12 = vadd.f32 %v184_v8, %v183_v63 }
  0x71   :  { %v195_v13 = vadd.f32 %v194_v9, %v193_v1  ;;  %v202_v14 = vadd.f32 %v201_v10, %v200_v2  ;;  %v206_v15 = vsel %vm205_vm10, 1.0, %v345_v0  ;;  %v213_v16 = vsel %vm205_vm10, %v392_v25, 0.0 }
  0x72   :  { %v223_v17 = vsel %vm222_vm11, 1.0, %v345_v0  ;;  %v230_v18 = vsel %vm222_vm11, %v392_v25, 0.0  ;;  %186 = vst [vmem:[#allocation7 + $0x6] sm:$0x1] %v178_v11  ;;  %187 = vst [vmem:[#allocation7 + $0x16] sm:$0x1] %v185_v12 }
  0x73   :  { %203 = vst [vmem:[#allocation7 + $0x7] sm:$0x1] %v195_v13  ;;  %204 = vst [vmem:[#allocation7 + $0x17] sm:$0x1] %v202_v14  ;;  %v207_v19 = vrot.slane %v206_v15, 4  ;;  %v214_v20 = vrot.slane %v213_v16, 4 }
  0x74   :  { %v224_v21 = vrot.slane %v223_v17, 4  ;;  %v231_v26 = vrot.slane %v230_v18, 4 }
  0x75   :  { %v208_v22 = vadd.f32 %v207_v19, %v206_v15  ;;  %v215_v23 = vadd.f32 %v214_v20, %v213_v16 }
  0x76   :  { %v225_v24 = vadd.f32 %v224_v21, %v223_v17  ;;  %v232_v27 = vadd.f32 %v231_v26, %v230_v18 }
  0x77   :  { %v209_v28 = vrot.slane %v208_v22, 2  ;;  %v216_v29 = vrot.slane %v215_v23, 2 }
  0x78   :  { %v226_v30 = vrot.slane %v225_v24, 2  ;;  %v233_v31 = vrot.slane %v232_v27, 2 }
  0x79   :  { %v210_v32 = vadd.f32 %v209_v28, %v208_v22  ;;  %v217_v0 = vadd.f32 %v216_v29, %v215_v23 }
  0x7a   :  { %v227_v33 = vadd.f32 %v226_v30, %v225_v24  ;;  %v234_v25 = vadd.f32 %v233_v31, %v232_v27 }
  0x7b   :  { %v211_v34 = vrot.slane %v210_v32, 1  ;;  %v218_v35 = vrot.slane %v217_v0, 1 }
  0x7c   :  { %v228_v36 = vrot.slane %v227_v33, 1  ;;  %v235_v37 = vrot.slane %v234_v25, 1 }
  0x7d   :  { %v212_v38 = vadd.f32 %v211_v34, %v210_v32  ;;  %v219_v39 = vadd.f32 %v218_v35, %v217_v0 }
  0x7e   :  { %v229_v40 = vadd.f32 %v228_v36, %v227_v33  ;;  %v236_v41 = vadd.f32 %v235_v37, %v234_v25 }
  0x7f   :  { %220 = vst [vmem:[#allocation7 + $0x8] sm:$0x1] %v212_v38  ;;  %221 = vst [vmem:[#allocation7 + $0x18] sm:$0x1] %v219_v39 }
  0x80   :  { %237 = vst [vmem:[#allocation7 + $0x9] sm:$0x1] %v229_v40  ;;  %238 = vst [vmem:[#allocation7 + $0x19] sm:$0x1] %v236_v41 }
  0x81   :  { %326 = shalt.err (!%p323_p6)
}
  0x82   :  { %s327_s8 = scalar_lea.hbm %s448_s2, 512 }
  0x83   :  { %p328_p7 = scmp.ne.s32.totalorder %s448_s2, %s327_s8  ;;  %p331_p8 = scmp.lt.u32.totalorder %s327_s8, %s448_s2 }
  0x85   :  { %p333_p9 = pnand %p331_p8, %p328_p7 }
  0x87   :  { %336 = shalt.err (!%p333_p9)
}
  0x88   :  { %s347_s13 = smov 128   ;;  %s348_s14 = smov 8  }
  0x89   :  { %250 = dma.vmem_to_hbm [thread:$0]  %s245_s4, 512, %s448_s2, [#allocation4], %s347_s13, %s347_s13, %s348_s14  }
  0x8a   :  { %341 = dma.done.wait [#allocation4], 512  }
  0x8b   :  { %342 = vsyncadd [#allocation4], 4294966784 }
  0x8c   :  { %254 = vsyncpa [#allocation3], 1 }
  0x8d   :  { %255 = vsyncpa [#allocation6], 1 }
  0x8e   :  { %256 = vsyncpa [#allocation4], 1 }

</bundles_post_ra>
